<compile_context>
chip_gen: v5e
topology: v5e:2x2
jax: 0.10.0
libtpu: 0.0.40
codegen_flags: <defaults>
</compile_context>

<pallas_src>
import jax
import jax.numpy as jnp
from jax.experimental import pallas as pl
from jax.experimental.pallas import tpu as pltpu


def _cross_attention_kernel(q_in_ref, kv_in_ref, wq_ref, wk_ref, wv_ref,
                            wo_ref, bo_ref, o_ref, acc_ref):
    """One (batch-tile, head) grid step."""
    h = pl.program_id(1)

    bt, S1, D1 = q_in_ref.shape
    _, S2, D2 = kv_in_ref.shape
    k_dim = wq_ref.shape[2]
    v_dim = wv_ref.shape[2]

    @pl.when(h == 0)
    def _init():
        acc_ref[...] = jnp.zeros_like(acc_ref)

    # Activations for this batch tile (already bf16; cast happened in wrapper).
    x_q = q_in_ref[...].reshape(bt * S1, D1)     # (bt*S1, D1)
    x_kv = kv_in_ref[...].reshape(bt * S2, D2)   # (bt*S2, D2)

    # Per-head weights, pre-transposed to (in, out) in the wrapper.
    wq = wq_ref[0]        # (D1, k_dim)
    wk = wk_ref[0]        # (D2, k_dim)
    wv = wv_ref[0]        # (D2, v_dim)
    wo = wo_ref[0]        # (v_dim, out_dim)

    scale = 1.0 / (float(k_dim) ** 0.5)

    # Projections for this head: bf16 operands on the MXU, f32 accumulation.
    q = jnp.dot(x_q, wq, preferred_element_type=jnp.float32) * scale
    k = jnp.dot(x_kv, wk, preferred_element_type=jnp.float32)
    v = jnp.dot(x_kv, wv, preferred_element_type=jnp.float32)

    qh = q.astype(jnp.bfloat16).reshape(bt, S1, k_dim)
    kh = k.astype(jnp.bfloat16).reshape(bt, S2, k_dim)
    vh = v.astype(jnp.bfloat16).reshape(bt, S2, v_dim)

    # Scaled dot-product attention (softmax in f32).
    s = jnp.einsum('bqd,bkd->bqk', qh, kh,
                   preferred_element_type=jnp.float32)           # (bt, S1, S2)
    # TODO(synk): optional `mask` argument (masked_fill) not implemented;
    #             this kernel covers the mask=None path.
    s = s - jnp.max(s, axis=-1, keepdims=True)
    p = jnp.exp(s)
    p = p * pl.reciprocal(jnp.sum(p, axis=-1, keepdims=True), approx=True)

    o = jnp.einsum('bqk,bkd->bqd', p.astype(jnp.bfloat16), vh,
                   preferred_element_type=jnp.float32)           # (bt, S1, v_dim)

    # This head's slice of the output projection, summed over heads
    # (== concat heads then project with the full Wo).
    o2 = o.astype(jnp.bfloat16).reshape(bt * S1, v_dim)
    acc_ref[...] += jnp.dot(o2, wo, preferred_element_type=jnp.float32)

    @pl.when(h == pl.num_programs(1) - 1)
    def _finalize():
        out = acc_ref[...] + bo_ref[...]                         # bias broadcast
        o_ref[...] = out.reshape(o_ref.shape).astype(o_ref.dtype)


def cross_attention_pallas(query, key_value, wq, wk, wv, wo, bo,
                           *, num_heads, k_dim, v_dim):
    B, S1, D1 = query.shape
    _, S2, D2 = key_value.shape
    out_dim = wo.shape[0]          # == in_dim1 for this module

    # bf16 operands for the MXU (f32 accumulation inside the kernel).
    q_bf = query.astype(jnp.bfloat16)
    kv_bf = key_value.astype(jnp.bfloat16)

    # One-time wrapper-side weight prep: transpose to (in, out) and split per
    # head so the kernel never transposes or lane-slices weight tiles.
    wq_h = wq.reshape(num_heads, k_dim, D1).transpose(0, 2, 1).astype(jnp.bfloat16)   # (H, D1, Kd)
    wk_h = wk.reshape(num_heads, k_dim, D2).transpose(0, 2, 1).astype(jnp.bfloat16)   # (H, D2, Kd)
    wv_h = wv.reshape(num_heads, v_dim, D2).transpose(0, 2, 1).astype(jnp.bfloat16)   # (H, D2, Vd)
    wo_h = wo.T.reshape(num_heads, v_dim, out_dim).astype(jnp.bfloat16)               # (H, Vd, Do)
    bo2d = bo.reshape(1, out_dim).astype(jnp.float32)

    # Batch tiling: fold batches into larger blocks but keep the parallel axis
    # at extent >= 2 when possible (v7x has 2 TensorCores per chip).
    if B >= 2 and B % 2 == 0:
        grid_b = 2
    else:
        grid_b = B
    bt = B // grid_b

    return pl.pallas_call(
        _cross_attention_kernel,
        out_shape=jax.ShapeDtypeStruct((B, S1, out_dim), query.dtype),
        grid=(grid_b, num_heads),
        in_specs=[
            pl.BlockSpec((bt, S1, D1), lambda b, h: (b, 0, 0)),         # query
            pl.BlockSpec((bt, S2, D2), lambda b, h: (b, 0, 0)),         # key_value
            pl.BlockSpec((1, D1, k_dim), lambda b, h: (h, 0, 0)),       # Wq (head h)
            pl.BlockSpec((1, D2, k_dim), lambda b, h: (h, 0, 0)),       # Wk (head h)
            pl.BlockSpec((1, D2, v_dim), lambda b, h: (h, 0, 0)),       # Wv (head h)
            pl.BlockSpec((1, v_dim, out_dim), lambda b, h: (h, 0, 0)),  # Wo (head h)
            pl.BlockSpec((1, out_dim), lambda b, h: (0, 0)),            # bias
        ],
        out_specs=pl.BlockSpec((bt, S1, out_dim), lambda b, h: (b, 0, 0)),
        scratch_shapes=[pltpu.VMEM((bt * S1, out_dim), jnp.float32)],
        compiler_params=pltpu.CompilerParams(
            dimension_semantics=("parallel", "arbitrary")),
    )(q_bf, kv_bf, wq_h, wk_h, wv_h, wo_h, bo2d)


def cross_attention_ref(query, key_value, wq, wk, wv, wo, bo,
                        *, num_heads, k_dim, v_dim):
    """Pure-JAX f32 reference mirroring the PyTorch forward (mask=None)."""
    B, S1, _ = query.shape
    S2 = key_value.shape[1]
    q = (query @ wq.T).reshape(B, S1, num_heads, k_dim).transpose(0, 2, 1, 3)
    k = (key_value @ wk.T).reshape(B, S2, num_heads, k_dim).transpose(0, 2, 3, 1)
    v = (key_value @ wv.T).reshape(B, S2, num_heads, v_dim).transpose(0, 2, 1, 3)
    attn = (q @ k) / (k_dim ** 0.5)
    attn = jax.nn.softmax(attn, axis=-1)
    out = (attn @ v).transpose(0, 2, 1, 3).reshape(B, S1, -1)
    return out @ wo.T + bo


if __name__ == "__main__":
    # Small shapes consistent with the module (per-head k_dim/v_dim).
    B, S1, S2 = 2, 8, 16
    in_dim1, in_dim2 = 32, 32
    k_dim, v_dim, num_heads = 16, 16, 4

    key = jax.random.PRNGKey(0)
    kq, kkv, k1, k2, k3, k4, k5 = jax.random.split(key, 7)

    query = jax.random.normal(kq, (B, S1, in_dim1), dtype=jnp.float32)
    key_value = jax.random.normal(kkv, (B, S2, in_dim2), dtype=jnp.float32)

    # Deterministic parameter init (shapes per nn.Linear: (out, in)).
    wq = jax.random.normal(k1, (k_dim * num_heads, in_dim1), jnp.float32) * 0.05
    wk = jax.random.normal(k2, (k_dim * num_heads, in_dim2), jnp.float32) * 0.05
    wv = jax.random.normal(k3, (v_dim * num_heads, in_dim2), jnp.float32) * 0.05
    wo = jax.random.normal(k4, (in_dim1, v_dim * num_heads), jnp.float32) * 0.05
    bo = jax.random.normal(k5, (in_dim1,), jnp.float32) * 0.05

    out = cross_attention_pallas(query, key_value, wq, wk, wv, wo, bo,
                                 num_heads=num_heads, k_dim=k_dim, v_dim=v_dim)
    out = jax.block_until_ready(out)

    ref = cross_attention_ref(query, key_value, wq, wk, wv, wo, bo,
                              num_heads=num_heads, k_dim=k_dim, v_dim=v_dim)
    assert out.shape == (B, S1, in_dim1)
    # bf16 MXU operands (f32 accumulation) + approx reciprocal => loosened tol.
    assert jnp.allclose(out, ref, atol=2e-2, rtol=2e-2), "mismatch vs reference"

    print("KERNEL_OK")
</pallas_src>

<mosaic_0001>
module attributes {stable_mosaic.version = 11 : i64} {
  func.func @_cross_attention_kernel(%arg0: i32, %arg1: i32, %arg2: memref<1x8x32xbf16, #tpu.memory_space<vmem>>, %arg3: memref<1x16x32xbf16, #tpu.memory_space<vmem>>, %arg4: memref<1x32x16xbf16, #tpu.memory_space<vmem>>, %arg5: memref<1x32x16xbf16, #tpu.memory_space<vmem>>, %arg6: memref<1x32x16xbf16, #tpu.memory_space<vmem>>, %arg7: memref<1x16x32xbf16, #tpu.memory_space<vmem>>, %arg8: memref<1x32xf32, #tpu.memory_space<vmem>>, %arg9: memref<1x8x32xf32, #tpu.memory_space<vmem>>, %arg10: memref<8x32xf32, #tpu.memory_space<vmem>>) attributes {dimension_semantics = [#tpu.dimension_semantics<parallel>, #tpu.dimension_semantics<arbitrary>], iteration_bounds = array<i64: 2, 4>, scalar_prefetch = 0 : i64, scratch_operands = 1 : i64, tpu.core_type = #tpu.core_type<tc>, window_params = [{transform_indices = @transform_0, window_bounds = array<i64: 1, 8, 32>}, {transform_indices = @transform_1, window_bounds = array<i64: 1, 16, 32>}, {transform_indices = @transform_2, window_bounds = array<i64: 1, 32, 16>}, {transform_indices = @transform_3, window_bounds = array<i64: 1, 32, 16>}, {transform_indices = @transform_4, window_bounds = array<i64: 1, 32, 16>}, {transform_indices = @transform_5, window_bounds = array<i64: 1, 16, 32>}, {pipeline_mode = #tpu.pipeline_mode<synchronous>, transform_indices = @transform_6, window_bounds = array<i64: 1, 32>}, {transform_indices = @transform_7, window_bounds = array<i64: 1, 8, 32>}]} {
    %c0_i32 = arith.constant 0 : i32
    %0 = arith.cmpi eq, %arg1, %c0_i32 : i32
    %1 = arith.extui %0 : i1 to i32
    %c0_i32_0 = arith.constant 0 : i32
    %2 = arith.cmpi ne, %1, %c0_i32_0 : i32
    scf.if %2 {
      %cst_31 = arith.constant 0.000000e+00 : f32
      %48 = vector.broadcast %cst_31 : f32 to vector<8x32xf32>
      %c0_32 = arith.constant 0 : index
      %c0_33 = arith.constant 0 : index
      %49 = vector.load %arg10[%c0_32, %c0_33] : memref<8x32xf32, #tpu.memory_space<vmem>>, vector<8x32xf32>
      tpu.vector_store %arg10[%c0_32, %c0_33], %48 {strides = array<i32>} : memref<8x32xf32, #tpu.memory_space<vmem>>, vector<8x32xf32>,
    } else {
    }
    %c0 = arith.constant 0 : index
    %c0_1 = arith.constant 0 : index
    %c0_2 = arith.constant 0 : index
    %3 = vector.load %arg2[%c0, %c0_1, %c0_2] : memref<1x8x32xbf16, #tpu.memory_space<vmem>>, vector<1x8x32xbf16>
    %4 = vector.shape_cast %3 : vector<1x8x32xbf16> to vector<8x32xbf16>
    %c0_3 = arith.constant 0 : index
    %c0_4 = arith.constant 0 : index
    %c0_5 = arith.constant 0 : index
    %5 = vector.load %arg3[%c0_3, %c0_4, %c0_5] : memref<1x16x32xbf16, #tpu.memory_space<vmem>>, vector<1x16x32xbf16>
    %6 = vector.shape_cast %5 : vector<1x16x32xbf16> to vector<16x32xbf16>
    %c0_6 = arith.constant 0 : index
    %c0_7 = arith.constant 0 : index
    %c0_8 = arith.constant 0 : index
    %7 = vector.load %arg4[%c0_6, %c0_7, %c0_8] : memref<1x32x16xbf16, #tpu.memory_space<vmem>>, vector<1x32x16xbf16>
    %8 = vector.shape_cast %7 : vector<1x32x16xbf16> to vector<32x16xbf16>
    %c0_9 = arith.constant 0 : index
    %c0_10 = arith.constant 0 : index
    %c0_11 = arith.constant 0 : index
    %9 = vector.load %arg5[%c0_9, %c0_10, %c0_11] : memref<1x32x16xbf16, #tpu.memory_space<vmem>>, vector<1x32x16xbf16>
    %10 = vector.shape_cast %9 : vector<1x32x16xbf16> to vector<32x16xbf16>
    %c0_12 = arith.constant 0 : index
    %c0_13 = arith.constant 0 : index
    %c0_14 = arith.constant 0 : index
    %11 = vector.load %arg6[%c0_12, %c0_13, %c0_14] : memref<1x32x16xbf16, #tpu.memory_space<vmem>>, vector<1x32x16xbf16>
    %12 = vector.shape_cast %11 : vector<1x32x16xbf16> to vector<32x16xbf16>
    %c0_15 = arith.constant 0 : index
    %c0_16 = arith.constant 0 : index
    %c0_17 = arith.constant 0 : index
    %13 = vector.load %arg7[%c0_15, %c0_16, %c0_17] : memref<1x16x32xbf16, #tpu.memory_space<vmem>>, vector<1x16x32xbf16>
    %14 = vector.shape_cast %13 : vector<1x16x32xbf16> to vector<16x32xbf16>
    %cst = arith.constant dense<0.000000e+00> : vector<8x16xf32>
    %15 = tpu.matmul %4, %8, %cst {dimension_numbers = #tpu.dot_dimension_numbers<[1], [0], [0], [1], [0, 0, 1, 1], [], []>} : vector<8x32xbf16>, vector<32x16xbf16>, vector<8x16xf32> -> vector<8x16xf32>
    %cst_18 = arith.constant 2.500000e-01 : f32
    %16 = vector.broadcast %cst_18 : f32 to vector<8x16xf32>
    %17 = arith.mulf %15, %16 : vector<8x16xf32>
    %cst_19 = arith.constant dense<0.000000e+00> : vector<16x16xf32>
    %18 = tpu.matmul %6, %10, %cst_19 {dimension_numbers = #tpu.dot_dimension_numbers<[1], [0], [0], [1], [0, 0, 1, 1], [], []>} : vector<16x32xbf16>, vector<32x16xbf16>, vector<16x16xf32> -> vector<16x16xf32>
    %cst_20 = arith.constant dense<0.000000e+00> : vector<16x16xf32>
    %19 = tpu.matmul %6, %12, %cst_20 {dimension_numbers = #tpu.dot_dimension_numbers<[1], [0], [0], [1], [0, 0, 1, 1], [], []>} : vector<16x32xbf16>, vector<32x16xbf16>, vector<16x16xf32> -> vector<16x16xf32>
    %20 = arith.truncf %17 : vector<8x16xf32> to vector<8x16xbf16>
    %21 = vector.shape_cast %20 : vector<8x16xbf16> to vector<1x8x16xbf16>
    %22 = arith.truncf %18 : vector<16x16xf32> to vector<16x16xbf16>
    %23 = vector.shape_cast %22 : vector<16x16xbf16> to vector<1x16x16xbf16>
    %24 = arith.truncf %19 : vector<16x16xf32> to vector<16x16xbf16>
    %25 = vector.shape_cast %24 : vector<16x16xbf16> to vector<1x16x16xbf16>
    "tpu.trace_start"() <{level = 10 : i32, message = "bqd,bkd->bqk"}> : () -> ()
    %cst_21 = arith.constant dense<0.000000e+00> : vector<1x8x16xf32>
    %26 = tpu.matmul %21, %23, %cst_21 {dimension_numbers = #tpu.dot_dimension_numbers<[2], [2], [1], [1], [0, 0, 0, 1, 1, 1], [0], [0]>} : vector<1x8x16xbf16>, vector<1x16x16xbf16>, vector<1x8x16xf32> -> vector<1x8x16xf32>
    "tpu.trace_stop"() : () -> ()
    %cst_22 = arith.constant dense<0xFF800000> : vector<1x8xf32>
    %27 = vector.multi_reduction <maximumf>, %26, %cst_22 [2] : vector<1x8x16xf32> to vector<1x8xf32>
    %28 = vector.shape_cast %27 : vector<1x8xf32> to vector<1x8x1xf32>
    %29 = vector.broadcast %28 : vector<1x8x1xf32> to vector<1x8x16xf32>
    %30 = arith.subf %26, %29 : vector<1x8x16xf32>
    %31 = math.exp %30 : vector<1x8x16xf32>
    %cst_23 = arith.constant dense<0.000000e+00> : vector<1x8xf32>
    %32 = vector.multi_reduction <add>, %31, %cst_23 [2] : vector<1x8x16xf32> to vector<1x8xf32>
    %33 = vector.shape_cast %32 : vector<1x8xf32> to vector<1x8x1xf32>
    %34 = tpu.reciprocal %33 {approx = true} : vector<1x8x1xf32> -> vector<1x8x1xf32>
    %35 = vector.broadcast %34 : vector<1x8x1xf32> to vector<1x8x16xf32>
    %36 = arith.mulf %31, %35 : vector<1x8x16xf32>
    %37 = arith.truncf %36 : vector<1x8x16xf32> to vector<1x8x16xbf16>
    "tpu.trace_start"() <{level = 10 : i32, message = "bqk,bkd->bqd"}> : () -> ()
    %cst_24 = arith.constant dense<0.000000e+00> : vector<1x8x16xf32>
    %38 = tpu.matmul %37, %25, %cst_24 {dimension_numbers = #tpu.dot_dimension_numbers<[2], [1], [1], [2], [0, 0, 0, 1, 1, 2], [0], [0]>} : vector<1x8x16xbf16>, vector<1x16x16xbf16>, vector<1x8x16xf32> -> vector<1x8x16xf32>
    "tpu.trace_stop"() : () -> ()
    %39 = arith.truncf %38 : vector<1x8x16xf32> to vector<1x8x16xbf16>
    %40 = vector.shape_cast %39 : vector<1x8x16xbf16> to vector<8x16xbf16>
    %c0_25 = arith.constant 0 : index
    %c0_26 = arith.constant 0 : index
    %41 = vector.load %arg10[%c0_25, %c0_26] : memref<8x32xf32, #tpu.memory_space<vmem>>, vector<8x32xf32>
    %cst_27 = arith.constant dense<0.000000e+00> : vector<8x32xf32>
    %42 = tpu.matmul %40, %14, %cst_27 {dimension_numbers = #tpu.dot_dimension_numbers<[1], [0], [0], [1], [0, 0, 1, 1], [], []>} : vector<8x16xbf16>, vector<16x32xbf16>, vector<8x32xf32> -> vector<8x32xf32>
    %43 = arith.addf %41, %42 : vector<8x32xf32>
    %c0_28 = arith.constant 0 : index
    %c0_29 = arith.constant 0 : index
    %44 = vector.load %arg10[%c0_28, %c0_29] : memref<8x32xf32, #tpu.memory_space<vmem>>, vector<8x32xf32>
    tpu.vector_store %arg10[%c0_28, %c0_29], %43 {strides = array<i32>} : memref<8x32xf32, #tpu.memory_space<vmem>>, vector<8x32xf32>,
    %c3_i32 = arith.constant 3 : i32
    %45 = arith.cmpi eq, %arg1, %c3_i32 : i32
    %46 = arith.extui %45 : i1 to i32
    %c0_i32_30 = arith.constant 0 : i32
    %47 = arith.cmpi ne, %46, %c0_i32_30 : i32
    scf.if %47 {
      %c0_31 = arith.constant 0 : index
      %c0_32 = arith.constant 0 : index
      %48 = vector.load %arg10[%c0_31, %c0_32] : memref<8x32xf32, #tpu.memory_space<vmem>>, vector<8x32xf32>
      %c0_33 = arith.constant 0 : index
      %c0_34 = arith.constant 0 : index
      %49 = vector.load %arg8[%c0_33, %c0_34] : memref<1x32xf32, #tpu.memory_space<vmem>>, vector<1x32xf32>
      %50 = vector.broadcast %49 : vector<1x32xf32> to vector<8x32xf32>
      %51 = arith.addf %48, %50 : vector<8x32xf32>
      %52 = vector.shape_cast %51 : vector<8x32xf32> to vector<1x8x32xf32>
      %c0_35 = arith.constant 0 : index
      %c0_36 = arith.constant 0 : index
      %c0_37 = arith.constant 0 : index
      %53 = vector.load %arg9[%c0_35, %c0_36, %c0_37] : memref<1x8x32xf32, #tpu.memory_space<vmem>>, vector<1x8x32xf32>
      tpu.vector_store %arg9[%c0_35, %c0_36, %c0_37], %52 {strides = array<i32>} : memref<1x8x32xf32, #tpu.memory_space<vmem>>, vector<1x8x32xf32>,
    } else {
    }
    return
  }
  func.func @transform_0(%arg0: i32, %arg1: i32) -> (i32, i32, i32) {
    %c0_i32 = arith.constant 0 : i32
    %c0_i32_0 = arith.constant 0 : i32
    %c0_i32_1 = arith.constant 0 : i32
    return %arg0, %c0_i32, %c0_i32_0 : i32, i32, i32
  }
  func.func @transform_1(%arg0: i32, %arg1: i32) -> (i32, i32, i32) {
    %c0_i32 = arith.constant 0 : i32
    %c0_i32_0 = arith.constant 0 : i32
    %c0_i32_1 = arith.constant 0 : i32
    return %arg0, %c0_i32, %c0_i32_0 : i32, i32, i32
  }
  func.func @transform_2(%arg0: i32, %arg1: i32) -> (i32, i32, i32) {
    %c0_i32 = arith.constant 0 : i32
    %c0_i32_0 = arith.constant 0 : i32
    %c0_i32_1 = arith.constant 0 : i32
    return %arg1, %c0_i32, %c0_i32_0 : i32, i32, i32
  }
  func.func @transform_3(%arg0: i32, %arg1: i32) -> (i32, i32, i32) {
    %c0_i32 = arith.constant 0 : i32
    %c0_i32_0 = arith.constant 0 : i32
    %c0_i32_1 = arith.constant 0 : i32
    return %arg1, %c0_i32, %c0_i32_0 : i32, i32, i32
  }
  func.func @transform_4(%arg0: i32, %arg1: i32) -> (i32, i32, i32) {
    %c0_i32 = arith.constant 0 : i32
    %c0_i32_0 = arith.constant 0 : i32
    %c0_i32_1 = arith.constant 0 : i32
    return %arg1, %c0_i32, %c0_i32_0 : i32, i32, i32
  }
  func.func @transform_5(%arg0: i32, %arg1: i32) -> (i32, i32, i32) {
    %c0_i32 = arith.constant 0 : i32
    %c0_i32_0 = arith.constant 0 : i32
    %c0_i32_1 = arith.constant 0 : i32
    return %arg1, %c0_i32, %c0_i32_0 : i32, i32, i32
  }
  func.func @transform_6(%arg0: i32, %arg1: i32) -> (i32, i32) {
    %c0_i32 = arith.constant 0 : i32
    %c0_i32_0 = arith.constant 0 : i32
    %c0_i32_1 = arith.constant 0 : i32
    return %c0_i32, %c0_i32_0 : i32, i32
  }
  func.func @transform_7(%arg0: i32, %arg1: i32) -> (i32, i32, i32) {
    %c0_i32 = arith.constant 0 : i32
    %c0_i32_0 = arith.constant 0 : i32
    %c0_i32_1 = arith.constant 0 : i32
    return %arg0, %c0_i32, %c0_i32_0 : i32, i32, i32
  }
}

</mosaic_0001>

<bundles_post_ra>
// kernel: tpu_custom_call.1
= control target key start
LH: loop header
LB: loop body
LE: loop exit
PB: predicated region body
PF: predicated region fallthrough
CT: control target
= control target key end

     0   :  { %s1203_s0 = inlined_call_operand.vmem [shape: bf16[2,8,32], index: 0, kind: input, shape index: {}]   ;;  %s1204_s1 = inlined_call_operand.vmem [shape: bf16[2,16,32], index: 1, kind: input, shape index: {}]   ;;  %s1205_s2 = inlined_call_operand.vmem [shape: bf16[4,32,16], index: 2, kind: input, shape index: {}]   ;;  %s1206_s3 = inlined_call_operand.vmem [shape: bf16[4,32,16], index: 3, kind: input, shape index: {}]   ;;  %s1207_s4 = inlined_call_operand.vmem [shape: bf16[4,32,16], index: 4, kind: input, shape index: {}]   ;;  %s1208_s5 = inlined_call_operand.vmem [shape: bf16[4,16,32], index: 5, kind: input, shape index: {}]   ;;  %s1209_s6 = inlined_call_operand.vmem [shape: f32[1,32], index: 6, kind: input, shape index: {}]   ;;  %s1210_s7 = inlined_call_operand.hbm [shape: f32[2,8,32], index: 7, kind: output, shape index: {}]  }
   0x1   :  { %1223 = sst [smem:[#allocation16_spill]] %s1210_s7 }
   0x2   :  { %12 = vsyncpa [#allocation4], 0 }
   0x3   :  { %14 = vsyncpa [#allocation4 + $0x1], 0  ;;  %s1035_s24 = smov 0   ;;  %s1037_s25 = smov 0  }
   0x4   :  { %s1039_s26 = smov 0   ;;  %s1041_s27 = smov 0  }
   0x5   :  { %s1043_s28 = smov 0   ;;  %s1045_s29 = smov 0  }
   0x6   :  { %s1047_s30 = smov 0   ;;  %s1049_s8 = smov 0  }
   0x7 LB: > { %1224 = sst [smem:[#allocation6_spill]] %s964_s24  ;;  %s747_s9 = sadd.s32 4294967295, %s992_s8   ;;  %s992_s8 = sphi %s1049_s8, %s20_s8   ;;  %s988_s30 = sphi %s1047_s30, %s1252_s30   ;;  %s984_s29 = sphi %s1045_s29, %s1251_s29   ;;  %s980_s28 = sphi %s1043_s28, %s1246_s28   ;;  %s976_s27 = sphi %s1041_s27, %s1245_s27   ;;  %s972_s26 = sphi %s1039_s26, %s1244_s26   ;;  %s968_s25 = sphi %s1037_s25, %s1250_s25   ;;  %s964_s24 = sphi %s1035_s24, %s1249_s24  }
   0x8   : > { %1225 = sst [smem:[#allocation7_spill]] %s972_s26  ;;  %s748_s10 = sadd.s32 4294967294, %s992_s8  }
   0x9   : > { %1226 = sst [smem:[#allocation8_spill]] %s984_s29  ;;  %s29_s11 = sadd.s32 1, %s984_s29 }
   0xa   : > { %1227 = sst [smem:[#allocation9_spill]] %s988_s30  ;;  %p30_p0 = scmp.ge.s32.totalorder %s29_s11, 4 }
   0xb   : > { %1228 = sst [smem:[#allocation10_spill]] %s992_s8  ;;  %s32_s12 = sadd.s32 1, %s988_s30 }
   0xc   : > { %p226_p1 = scmp.ne.s32.totalorder %s972_s26, %s968_s25  ;;  %p227_p2 = scmp.eq.s32.totalorder %s747_s9, 7 }
   0xd   : > { %s1254_s11 = smov (%p30_p0, %s29_s11), 0  ;;  %s1256_s12 = smov (!%p30_p0, %s32_s12), %s988_s30 }
   0xe   : > { %1229 = sst [smem:[#allocation11_spill]] %s1254_s11  ;;  %p1084_p3 = por %p227_p2, %p226_p1 }
   0xf   : > { %p232_p4 = scmp.ne.s32.totalorder %s968_s25, %s964_s24  ;;  %p34_p5 = scmp.ge.s32.totalorder %s1256_s12, 2 }
  0x10   : > { %s1230_s13 = scalar_select %p1084_p3, 1, 0 }
  0x11   : > { %p233_p6 = scmp.eq.s32.totalorder %s748_s10, 7  ;;  %p751_p7 = scmp.ge.s32.totalorder %s992_s8, 1 }
  0x12   : > { %1231 = sst [smem:[#allocation12_spill]] %s1230_s13  ;;  %p301_p8 = scmp.lt.s32.totalorder %s992_s8, 9 }
  0x13   : > { %s1258_s12 = smov (%p34_p5, %s1256_s12), 0  ;;  %p1094_p9 = por %p233_p6, %p232_p4 }
  0x14   : > { %1232 = sst [smem:[#allocation13_spill]] %s1258_s12  ;;  %p302_p10 = pnand %p751_p7, %p301_p8 }
  0x15   : > { %s1233_s14 = scalar_select %p1094_p9, 1, 0 }
  0x16   : > { %s213_s15 = ssub.s32 %s988_s30, %s1258_s12  ;;  %s216_s16 = sadd.s32 1, %s972_s26 }
  0x17   : > { %1234 = sst [smem:[#allocation14_spill]] %s1233_s14  ;;  %p214_p11 = scmp.eq.s32.totalorder %s213_s15, 0 }
  0x18   : > { %305 = sbr.rel (%p302_p10) target bundleno = 874 (0x36a), region = 48  ;;  %s1215_s18 = sand.u32 (!%p302_p10), 1, %s968_s25  }
  0x19   : > { %s1102_s17 = scalar_select %p214_p11, %s972_s26, %s216_s16  }
  0x1a   : > { %p357_p12 = scmp.lt.s32.totalorder (!%p302_p10), %s980_s28, 1  ;;  %s1108_s19 = sshll.u32 (!%p302_p10), %s1215_s18, 3 }
  0x1b   : > { %1235 = sst [smem:[#allocation15_spill]] %s1102_s17  ;;  %p366_p13 = scmp.lt.s32.totalorder (!%p302_p10), %s976_s27, 3 }
  0x1c   : > { %p764_p0 = scmp.ne.s32.totalorder (!%p302_p10), %s976_s27, 0 }
  0x1d   : > { %s358_s20 = scalar_select %p357_p12, %s980_s28, 1 }
  0x1e   : > { %s367_s21 = scalar_select %p366_p13, %s976_s27, 3 }
  0x1f   : > { %s753_s22 = sshll.u32 %s358_s20, 2  ;;  %s808_s23 = sshll.u32 %s358_s20, 3 }
  0x20   : > { %s360_s15 = scalar_lea.vmem %s1203_s0, %s753_s22  ;;  %s365_s11 = scalar_lea.vmem %s1204_s1, %s808_s23 }
  0x21   : > { %s809_s30 = sshll.u32 %s367_s21, 4  ;;  %s812_s29 = sshll.u32 %s367_s21, 3 }
  0x22   : > { %s370_s18 = scalar_lea.vmem %s1205_s2, %s809_s30  ;;  %s375_s8 = scalar_lea.vmem %s1206_s3, %s809_s30 }
  0x23   : > { %s1128_s13 = scalar_lea.vmem %s1207_s4, %s809_s30  ;;  %s1133_s12 = scalar_lea.vmem %s1208_s5, %s812_s29 }
  0x24   : > { %s356_s23 = scalar_lea.vmem [#allocation3], %s1108_s19  ;;  %390 = sbr.rel (%p764_p0) target bundleno = 43 (0x2b), region = 52 }
  0x29   : > { %vm391_vm0 = vcmask 261120   ;;  %v994_v0 = vmov 0.0  }
  0x2a   : > { %392 = vst.msk [vmem:[#allocation2] sm:$0xff] %vm391_vm0, %v994_v0 }
  0x2b PF: > { %v817_v1 = vld [vmem:[%s375_s8 + $0x8] sm:$0xff]  ;;  %v816_v3 = vld [vmem:[%s375_s8] sm:$0xff]  ;;  %vm422_vm1 = vcmask 261120   ;;  %vm510_vm2 = vcmask 130048   ;;  %p803_p1 = scmp.ne.s32.totalorder %s976_s27, 3 }
  0x2c   : > { %v815_v2 = vld [vmem:[%s370_s18 + $0x8] sm:$0xff]  ;;  %466 = vmatpush.bf16.msra.mxu1 %v817_v1  ;;  %v814_v4 = vld [vmem:[%s370_s18] sm:$0xff] }
  0x2d   : > { %432 = vmatpush.bf16.msra.mxu0 %v815_v2  ;;  %v813_v5 = vld [vmem:[%s365_s11] sm:$0xff]  ;;  %v819_v19 = vld [vmem:[%s1128_s13 + $0x8] sm:$0xff] }
  0x2e   : > { %v393_v6 = vld [vmem:[%s360_s15] sm:$0xf]  ;;  %492 = vmatpush.bf16.msra.mxu2 %v819_v19 }
  0x2f   : > { %v818_v20 = vld [vmem:[%s1128_s13] sm:$0xff] }
  0x30   : > { %467 = vmatpush.bf16.msra.mxu1 %v816_v3  ;;  %v820_v36 = vld [vmem:[%s1133_s12] sm:$0xff] }
  0x31   : > { %433 = vmatpush.bf16.msra.mxu0 %v814_v4  ;;  %v565_v44 = vld [vmem:[#allocation2] sm:$0xff] }
  0x32   : > { %493 = vmatpush.bf16.msra.mxu2 %v818_v20 }
  0x33   : > { %786 = vmatmul.msk.bf16.vlgmr.msra.gmra.mxu1 %vm422_vm1, %v813_v5 }
  0x34   : > { %773 = vmatmul.msk.bf16.vlgmr.msra.gmra.mxu0 %vm422_vm1, %v393_v6  ;;  %582 = vmatpush.bf16.msrb.mxu1 %v820_v36 }
  0x35   : > { %795 = vmatmul.msk.bf16.vlgmr.msra.gmra.mxu2 %vm422_vm1, %v813_v5 }
  0xb0   : > { %v469_v7 = vpop.f32.mrf.mxu1 }
  0xb1   : > { %v435_v8 = vpop.f32.mrf.mxu0  ;;  %v501_v9 = vpack.c.bf16 %v469_v7, %v469_v7 }
  0xb2   : > { %v439_v16 = vmul.f32 0.25, %v435_v8 }
  0xb3   : > { %v507_v13 = vunpack.c.l.b16 %v501_v9 }
  0xb4   : > { %v500_v18 = vpack.c.bf16 %v439_v16, %v439_v16 }
  0xb8   : > { %v471_v10 = vpop.f32.mrf.mxu1  ;;  %v495_v24 = vpop.f32.mrf.mxu2 }
  0xb9   : > { %v502_v11 = vpack.c.bf16 %v471_v10, %v471_v10  ;;  %v437_v12 = vpop.f32.mrf.mxu0  ;;  %v503_v28 = vpack.c.bf16 %v495_v24, %v495_v24 }
  0xbb   : > { %v508_v14 = vunpack.c.l.b16 %v502_v11  ;;  %v544_v30 = vunpack.c.l.b16 %v503_v28 }
  0xbd   : > { %v509_v15 = vpack.c.b16 %v508_v14, %v507_v13 }
  0xbf   : > { %v515_v17 = vsel %vm510_vm2, %v509_v15, 0 }
  0xc0   : > { %524 = vmatpush.bf16.xpose.msra.mxu3 %v515_v17  ;;  %v497_v29 = vpop.f32.mrf.mxu2 }
  0xc1   : > { %v504_v31 = vpack.c.bf16 %v497_v29, %v497_v29 }
  0xc3   : > { %v545_v32 = vunpack.c.l.b16 %v504_v31 }
  0xc5   : > { %v546_v35 = vpack.c.b16 %v545_v32, %v544_v30 }
  0xc7   : > { %796 = vmatmul.msk.bf16.vlgmr.msra.gmra.mxu3 %vm510_vm2, %v500_v18  ;;  %558 = vmatpush.bf16.msrb.mxu0 %v546_v35 }
 0x14a   : > { %v526_v21 = vpop.f32.mrf.mxu3 }
 0x14b   : > { %v530_v22 = vsel %vm510_vm2, %v526_v21, -inf }
 0x14c   : > { %531 = vmax.xlane.f32.xlu0 %v530_v22 }
 0x152   : > { %v528_v23 = vpop.f32.mrf.mxu3 }
 0x1bf   : > { %v532_v25 = vpop.xlane.xlu0 %531 }
 0x1c0   : > { %v533_v26 = vsub.f32 %v526_v21, %v532_v25 }
 0x1c2   : > { %v534_v27 = vmul.f32 1.442695, %v533_v26 }
 0x1c4   : > { %893 = vpow2.f32 %v534_v27 }
 0x1ca   : > { %v894_v33 = vpop.eup %893 }
 0x1cb   : > { %v536_v34 = vsel %vm510_vm2, %v894_v33, 0.0 }
 0x1cc   : > { %537 = vadd.xlane.f32.xlu0 %v536_v34 }
 0x23f   : > { %v538_v37 = vpop.xlane.xlu0 %537 }
 0x240   : > { %895 = vrcp.f32 %v538_v37 }
 0x246   : > { %v896_v38 = vpop.eup %895 }
 0x247   : > { %v540_v39 = vmul.f32 %v896_v38, %v894_v33 }
 0x249   : > { %v541_v40 = vpack.c.bf16 %v540_v39, %v540_v39 }
 0x24b   : > { %797 = vmatmul.msk.bf16.vlgmr.msrb.gmra.mxu0 %vm510_vm2, %v541_v40 }
 0x2c8   : > { %v560_v41 = vpop.f32.mrf.mxu0 }
 0x2c9   : > { %v564_v42 = vpack.c.bf16 %v560_v41, %v560_v41 }
 0x2cb   : > { %802 = vmatmul.msk.bf16.vlgmr.msrb.gmra.mxu1 %vm510_vm2, %v564_v42 }
 0x2d0   : > { %v562_v43 = vpop.f32.mrf.mxu0 }
 0x348   : > { %v584_v45 = vpop.f32.mrf.mxu1 }
 0x349   : > { %v588_v46 = vadd.f32 %v584_v45, %v565_v44 }
 0x34b   : > { %589 = vst.msk [vmem:[#allocation2] sm:$0xff] %vm422_vm1, %v588_v46 }
 0x34c   : > { %593 = sbr.rel (%p803_p1) target bundleno = 854 (0x356), region = 56 }
 0x350   : > { %v586_v47 = vpop.f32.mrf.mxu1 }
 0x351   : > { %v897_v49 = vld [vmem:[%s1209_s6] ss:$0 sm:$0xff] }
 0x352   : > { %v594_v48 = vld [vmem:[#allocation2] sm:$0xff] }
 0x353   : > { %v599_v50 = vadd.f32 %v897_v49, %v594_v48 }
 0x355   : > { %600 = vst.msk [vmem:[%s356_s23] sm:$0xff] %vm422_vm1, %v599_v50 }
 0x356 PF: > { %s805_s29 = sshll.u32 %s980_s28, 3  ;;  %s1237_s27 = sld [smem:[#allocation16_spill]] }
 0x357   : > { %s614_s14 = sshll.u32 %s356_s23, 4  ;;  %s1239_s18 = sand.u32 1, %s968_s25   ;;  %s615_s14 = int_to_ptr.vmem [resolvable:$true] %s614_s14 }
 0x358   : > { %s602_s21 = scalar_lea.sflag [#allocation4], %s1239_s18 }
 0x35c   : > { %s1238_s11 = smov %s1237_s27  ;;  %s612_s13 = scalar_lea.hbm %s1237_s27, %s805_s29 }
 0x35d   : > { %s616_s17 = sshll.u32 %s612_s13, 4  ;;  %s918_s20 = scalar_lea.hbm %s1238_s11, 16  ;;  %s617_s17 = int_to_ptr.hbm [resolvable:$true] %s616_s17 }
 0x35e   : > { %s912_s10 = sshra.s32 %s617_s17, 4  ;;  %s913_s10 = int_to_ptr.hbm [resolvable:$true] %s912_s10 }
 0x35f   : > { %s914_s15 = scalar_lea.hbm %s913_s10, 8  ;;  %p919_p6 = scmp.lt.s32.totalorder %s913_s10, %s1238_s11 }
 0x360   : > { %p915_p2 = scmp.ne.s32.totalorder %s913_s10, %s914_s15  ;;  %p920_p7 = scmp.lt.s32.totalorder %s918_s20, %s914_s15 }
 0x362   : > { %p916_p4 = pnand %p915_p2, %p1084_p3  ;;  %p921_p8 = por %p920_p7, %p919_p6 }
 0x364   : > { %p917_p5 = pneg %p916_p4 }
 0x366   : > { %p922_p10 = pnand %p921_p8, %p917_p5 }
 0x368   : > { %925 = shalt.err (!%p922_p10)
}
 0x369   : > { %821 = dma.vmem_to_hbm [thread:$0]  (%p1084_p3), %s615_s14, 128, %s617_s17, %s602_s21  }
 0x36a PF: > { %s1240_s19 = sld [smem:[#allocation10_spill]] }
 0x36b   : > { %s1241_s12 = sld [smem:[#allocation6_spill]] }
 0x370   : > { %p827_p11 = scmp.ge.s32.totalorder %s1240_s19, 2 }
 0x371   : > { %s628_s7 = sand.u32 1, %s1241_s12  }
 0x372   : > { %p824_p12 = pnand %p827_p11, %p1094_p9  ;;  %s629_s24 = scalar_lea.sflag [#allocation4], %s628_s7 }
 0x374   : > { %p825_p13 = pneg %p824_p12 }
 0x376   : > { %959 = dma.done.wait (%p825_p13), %s629_s24, 128  }
 0x377   : > { %961 = vsyncadd (%p825_p13), %s629_s24, 4294967168  ;;  %s20_s8 = sadd.s32 1, %s1240_s19   ;;  %s1243_s29 = sld [smem:[#allocation7_spill]] }
 0x378   : > { %p17_p0 = scmp.ge.s32.totalorder %s20_s8, 10   ;;  %s1244_s26 = sld [smem:[#allocation15_spill]] }
 0x379   : > { %s1245_s27 = sld [smem:[#allocation8_spill]]  ;;  %s1249_s24 = smov %s968_s25 }
 0x37a   : > { %s1246_s28 = sld [smem:[#allocation9_spill]] }
 0x37b   : > { %s1247_s30 = sld [smem:[#allocation11_spill]] }
 0x37c   : > { %s1248_s13 = sld [smem:[#allocation13_spill]] }
 0x37d   : > { %s1250_s25 = smov %s1243_s29 }
 0x37e   :  { %19 = sbr.rel (!%p17_p0) target bundleno = 7 (0x7), region = 106 }
 0x381   : > { %s1251_s29 = smov %s1247_s30 }
 0x382   : > { %s1252_s30 = smov %s1248_s13 }
 0x383   :  { %635 = vsyncpa [#allocation4], 1 }
 0x384   :  { %637 = vsyncpa [#allocation4 + $0x1], 1 }

</bundles_post_ra>
